<compile_context>
chip_gen: v5e
topology: v5e:2x2
jax: 0.10.0
libtpu: 0.0.40
codegen_flags: <defaults>
</compile_context>

<pallas_src>
import functools

import numpy as np
import jax
import jax.numpy as jnp
from jax.experimental import pallas as pl
from jax.experimental.pallas import tpu as pltpu


def _erf_f32(x):
    # Float32-accurate erf (rational erfc approximation, |err| < 1.2e-7) built
    # only from ops guaranteed to lower on Mosaic.
    a = jnp.abs(x)
    t = 1.0 / (1.0 + 0.5 * a)
    poly = -1.26551223 + t * (1.00002368 + t * (0.37409196 + t * (0.09678418 +
           t * (-0.18628806 + t * (0.27886807 + t * (-1.13520398 + t * (1.48851587 +
           t * (-0.82215223 + t * 0.17087277))))))))
    erfc = t * jnp.exp(-a * a + poly)
    return jnp.where(x >= 0.0, 1.0 - erfc, erfc - 1.0)


def _gelu_exact(x):
    # PyTorch F.gelu default ("none" approximation): 0.5*x*(1+erf(x/sqrt(2)))
    return 0.5 * x * (1.0 + _erf_f32(x * 0.7071067811865476))


def _mac_or_dot(w, x, use_mxu):
    """(O, K) @ (K, L) -> (O, L) with f32 accumulation.

    For tiny K (shipped C=F=4) an MXU matmul is ~3% utilized and pays push/pop
    latency, so it is unrolled into K VPU broadcast-MACs instead."""
    if use_mxu:
        return jnp.dot(w, x, preferred_element_type=jnp.float32)
    w = w.astype(jnp.float32)
    x = x.astype(jnp.float32)
    k_dim = w.shape[1]
    acc = w[:, 0:1] * x[0:1, :]
    for k in range(1, k_dim):
        acc = acc + w[:, k:k + 1] * x[k:k + 1, :]
    return acc


def gcff_kernel(x_ref, w_in_ref, w_dw_ref, w_out_ref, mask_ref, o_ref, *,
                width, use_mxu):
    # x_ref    : (C, L)    channels x flattened (images*H*W) lanes
    # w_in_ref : (2F, C)   project_in 1x1 weights
    # w_dw_ref : (2F, 9)   3x3 depthwise weights, tap k = 3*(dy+1) + (dx+1)
    # w_out_ref: (C, F)    project_out 1x1 weights
    # mask_ref : (4, L)    [col-1 valid, col+1 valid, row-1 valid, row+1 valid]
    # o_ref    : (C, L)
    L = x_ref.shape[-1]
    F2 = w_dw_ref.shape[0]
    F = F2 // 2

    # ---- project_in: (2F, C) @ (C, L), f32 accumulation ----
    y = _mac_or_dot(w_in_ref[...], x_ref[...], use_mxu)          # (2F, L) f32

    # ---- separable masked-roll depthwise 3x3 (zero padding) ----
    w_dw = w_dw_ref[...]                                         # (2F, 9), read once
    masks = mask_ref[...]                                        # (4, L)
    cl, cr = masks[0:1, :], masks[1:2, :]
    ru, rd = masks[2:3, :], masks[3:4, :]

    # Horizontal taps (dx = -1, 0, +1), column-masked once, shared by all dy.
    # roll convention: roll(y, s)[p] = y[(p - s) % L]  ->  shift = (-dx) % L.
    taps = (pltpu.roll(y, 1, axis=1) * cl,                       # y[.., p-1]
            y,                                                   # y[.., p  ]
            pltpu.roll(y, L - 1, axis=1) * cr)                   # y[.., p+1]

    def hsum(dy):
        # Weighted horizontal sum for one kernel row (weight column slices are
        # each used exactly once -> no repeated broadcasts).
        b = 3 * (dy + 1)
        return (taps[0] * w_dw[:, b:b + 1]
                + taps[1] * w_dw[:, b + 1:b + 2]
                + taps[2] * w_dw[:, b + 2:b + 3])

    acc = hsum(0)                                                         # dy =  0
    acc = acc + pltpu.roll(hsum(-1), width % L, axis=1) * ru              # dy = -1
    acc = acc + pltpu.roll(hsum(1), (L - width) % L, axis=1) * rd         # dy = +1

    # ---- chunk along channels + gated GELU ----
    x1, x2 = acc[:F, :], acc[F:, :]
    g = _gelu_exact(x1) * x2                                     # (F, L) f32

    # ---- project_out: (C, F) @ (F, L) ----
    out = _mac_or_dot(w_out_ref[...], g, use_mxu)
    o_ref[...] = out.astype(o_ref.dtype)                         # lane-dense store


@functools.lru_cache(maxsize=None)
def _border_masks(H, W, n_images):
    """(4, n_images*H*W) f32 validity masks [col-1, col+1, row-1, row+1],
    built once with numpy (no per-call XLA dispatch)."""
    P = H * W
    r = np.arange(P) // W
    c = np.arange(P) % W
    m = np.stack([
        c - 1 >= 0,       # dx = -1 neighbour valid
        c + 1 < W,        # dx = +1 neighbour valid
        r - 1 >= 0,       # dy = -1 neighbour valid
        r + 1 < H,        # dy = +1 neighbour valid
    ]).astype(np.float32)                                        # (4, P)
    return jnp.asarray(np.tile(m, (1, n_images)))                # (4, n_images*P)


def _num_tensorcores():
    """Best-effort TensorCore count (1 on v5e/v6e, 2 on v7x); falls back to 1."""
    try:
        info = pltpu.get_tpu_info()
    except Exception:
        return 1
    for attr in ("num_cores", "tensorcore_count", "num_tensorcores",
                 "cores_per_chip", "core_count"):
        v = getattr(info, attr, None)
        try:
            v = int(v) if v is not None else 0
        except Exception:
            v = 0
        if v > 0:
            return v
    return 1


def gated_conv_feedforward(x_nchw, w_in_pt, w_dw_pt, w_out_pt):
    """x_nchw: (N, C, H, W); weights in PyTorch layouts:
       w_in_pt:  (2F, C)        (1x1 conv kernel squeezed)
       w_dw_pt:  (2F, 1, 3, 3)  (depthwise)
       w_out_pt: (C, F)         (1x1 conv kernel squeezed)
    Returns (N, C, H, W)."""
    N, C, H, W = x_nchw.shape
    F2 = w_in_pt.shape[0]
    F = F2 // 2
    P = H * W
    L = N * P

    # Channels-leading layout over the whole batch: (C, N*H*W).  The flattened
    # spatial*batch axis sits on the 128-lane axis, so all element-wise work and
    # the output store are lane-dense; the only wrapper cost is a tiny transpose.
    x_cl = x_nchw.reshape(N, C, P).transpose(1, 0, 2).reshape(C, L)
    w_in = w_in_pt                      # (2F, C)
    w_dw = w_dw_pt.reshape(F2, 9)       # (2F, 9)
    w_out = w_out_pt                    # (C, F)
    masks = _border_masks(H, W, N)      # (4, L) f32, cached per (H, W, N)

    # Grid: as many fat steps as there are TensorCores (1 on v5e/v6e, 2 on v7x),
    # provided whole images land in each block and lanes stay 128-aligned.
    cores = _num_tensorcores()
    G = 1
    if cores > 1 and N % cores == 0 and ((N // cores) * P) % 128 == 0:
        G = cores
    Lb = L // G

    use_mxu = min(C, F) >= 64           # tiny contractions run as VPU MACs

    kernel = functools.partial(gcff_kernel, width=W, use_mxu=use_mxu)

    out_cl = pl.pallas_call(
        kernel,
        out_shape=jax.ShapeDtypeStruct((C, L), x_cl.dtype),
        grid_spec=pltpu.PrefetchScalarGridSpec(
            num_scalar_prefetch=0,
            grid=(G,),
            in_specs=[
                pl.BlockSpec((C, Lb), lambda g: (0, g)),
                pl.BlockSpec((F2, C), lambda g: (0, 0)),
                pl.BlockSpec((F2, 9), lambda g: (0, 0)),
                pl.BlockSpec((C, F), lambda g: (0, 0)),
                pl.BlockSpec((4, Lb), lambda g: (0, g)),
            ],
            out_specs=pl.BlockSpec((C, Lb), lambda g: (0, g)),
        ),
        compiler_params=pltpu.CompilerParams(
            dimension_semantics=("parallel",),   # v7x: shard the 2 steps over 2 TCs
            vmem_limit_bytes=32 * 1024 * 1024,
        ),
    )(x_cl, w_in, w_dw, w_out, masks)

    return out_cl.reshape(C, N, P).transpose(1, 0, 2).reshape(N, C, H, W)


def reference_nchw(x, w_in_pt, w_dw_pt, w_out_pt):
    """Plain-JAX reference mirroring the PyTorch module (NCHW)."""
    hp = jax.lax.Precision.HIGHEST
    dn = ('NCHW', 'OIHW', 'NCHW')
    F2 = w_in_pt.shape[0]
    F = F2 // 2
    y = jax.lax.conv_general_dilated(x, w_in_pt[:, :, None, None], (1, 1),
                                     'VALID', dimension_numbers=dn,
                                     precision=hp)
    y = jax.lax.conv_general_dilated(y, w_dw_pt, (1, 1), ((1, 1), (1, 1)),
                                     dimension_numbers=dn,
                                     feature_group_count=F2, precision=hp)
    x1, x2 = y[:, :F], y[:, F:]
    g = jax.nn.gelu(x1, approximate=False) * x2
    out = jax.lax.conv_general_dilated(g, w_out_pt[:, :, None, None], (1, 1),
                                       'VALID', dimension_numbers=dn,
                                       precision=hp)
    return out


if __name__ == "__main__":
    key = jax.random.PRNGKey(0)
    dim, mult = 4, 1
    hidden = int(dim * mult)
    N, H, W = 2, 16, 16

    k1, k2, k3, k4 = jax.random.split(key, 4)
    x = jax.random.normal(k1, (N, dim, H, W), jnp.float32)
    # Deterministic synthetic weights (bias=False in the module).
    w_in_pt = jax.random.normal(k2, (2 * hidden, dim), jnp.float32) / jnp.sqrt(dim)
    w_dw_pt = jax.random.normal(k3, (2 * hidden, 1, 3, 3), jnp.float32) / 3.0
    w_out_pt = jax.random.normal(k4, (dim, hidden), jnp.float32) / jnp.sqrt(hidden)

    out = gated_conv_feedforward(x, w_in_pt, w_dw_pt, w_out_pt)
    out = jax.block_until_ready(out)

    ref = reference_nchw(x, w_in_pt, w_dw_pt, w_out_pt)
    assert out.shape == ref.shape == (N, dim, H, W)
    max_err = float(jnp.max(jnp.abs(out - ref)))
    if not bool(jnp.allclose(out, ref, atol=2e-4, rtol=2e-4)):
        raise AssertionError(f"Pallas kernel mismatch vs reference, max abs err = {max_err}")
    print("KERNEL_OK")
</pallas_src>

<mosaic_0001>
module attributes {stable_mosaic.version = 11 : i64} {
  func.func @gcff_kernel(%arg0: i32, %arg1: memref<4x512xf32, #tpu.memory_space<vmem>>, %arg2: memref<8x4xf32, #tpu.memory_space<vmem>>, %arg3: memref<8x9xf32, #tpu.memory_space<vmem>>, %arg4: memref<4x4xf32, #tpu.memory_space<vmem>>, %arg5: memref<4x512xf32, #tpu.memory_space<vmem>>, %arg6: memref<4x512xf32, #tpu.memory_space<vmem>>) attributes {dimension_semantics = [#tpu.dimension_semantics<parallel>], iteration_bounds = array<i64: 1>, scalar_prefetch = 0 : i64, scratch_operands = 0 : i64, tpu.core_type = #tpu.core_type<tc>, window_params = [{transform_indices = @transform_0, window_bounds = array<i64: 4, 512>}, {pipeline_mode = #tpu.pipeline_mode<synchronous>, transform_indices = @transform_1, window_bounds = array<i64: 8, 4>}, {pipeline_mode = #tpu.pipeline_mode<synchronous>, transform_indices = @transform_2, window_bounds = array<i64: 8, 9>}, {pipeline_mode = #tpu.pipeline_mode<synchronous>, transform_indices = @transform_3, window_bounds = array<i64: 4, 4>}, {transform_indices = @transform_4, window_bounds = array<i64: 4, 512>}, {transform_indices = @transform_5, window_bounds = array<i64: 4, 512>}]} {
    %c0 = arith.constant 0 : index
    %c0_0 = arith.constant 0 : index
    %0 = vector.load %arg2[%c0, %c0_0] : memref<8x4xf32, #tpu.memory_space<vmem>>, vector<8x4xf32>
    %c0_1 = arith.constant 0 : index
    %c0_2 = arith.constant 0 : index
    %1 = vector.load %arg1[%c0_1, %c0_2] : memref<4x512xf32, #tpu.memory_space<vmem>>, vector<4x512xf32>
    %2 = vector.extract_strided_slice %0 {offsets = [0, 0], sizes = [8, 1], strides = [1, 1]} : vector<8x4xf32> to vector<8x1xf32>
    %3 = vector.extract_strided_slice %1 {offsets = [0, 0], sizes = [1, 512], strides = [1, 1]} : vector<4x512xf32> to vector<1x512xf32>
    %4 = vector.broadcast %2 : vector<8x1xf32> to vector<8x512xf32>
    %5 = vector.broadcast %3 : vector<1x512xf32> to vector<8x512xf32>
    %6 = arith.mulf %4, %5 : vector<8x512xf32>
    %7 = vector.extract_strided_slice %0 {offsets = [0, 1], sizes = [8, 1], strides = [1, 1]} : vector<8x4xf32> to vector<8x1xf32>
    %8 = vector.extract_strided_slice %1 {offsets = [1, 0], sizes = [1, 512], strides = [1, 1]} : vector<4x512xf32> to vector<1x512xf32>
    %9 = vector.broadcast %7 : vector<8x1xf32> to vector<8x512xf32>
    %10 = vector.broadcast %8 : vector<1x512xf32> to vector<8x512xf32>
    %11 = arith.mulf %9, %10 : vector<8x512xf32>
    %12 = arith.addf %6, %11 : vector<8x512xf32>
    %13 = vector.extract_strided_slice %0 {offsets = [0, 2], sizes = [8, 1], strides = [1, 1]} : vector<8x4xf32> to vector<8x1xf32>
    %14 = vector.extract_strided_slice %1 {offsets = [2, 0], sizes = [1, 512], strides = [1, 1]} : vector<4x512xf32> to vector<1x512xf32>
    %15 = vector.broadcast %13 : vector<8x1xf32> to vector<8x512xf32>
    %16 = vector.broadcast %14 : vector<1x512xf32> to vector<8x512xf32>
    %17 = arith.mulf %15, %16 : vector<8x512xf32>
    %18 = arith.addf %12, %17 : vector<8x512xf32>
    %19 = vector.extract_strided_slice %0 {offsets = [0, 3], sizes = [8, 1], strides = [1, 1]} : vector<8x4xf32> to vector<8x1xf32>
    %20 = vector.extract_strided_slice %1 {offsets = [3, 0], sizes = [1, 512], strides = [1, 1]} : vector<4x512xf32> to vector<1x512xf32>
    %21 = vector.broadcast %19 : vector<8x1xf32> to vector<8x512xf32>
    %22 = vector.broadcast %20 : vector<1x512xf32> to vector<8x512xf32>
    %23 = arith.mulf %21, %22 : vector<8x512xf32>
    %24 = arith.addf %18, %23 : vector<8x512xf32>
    %c0_3 = arith.constant 0 : index
    %c0_4 = arith.constant 0 : index
    %25 = vector.load %arg3[%c0_3, %c0_4] : memref<8x9xf32, #tpu.memory_space<vmem>>, vector<8x9xf32>
    %c0_5 = arith.constant 0 : index
    %c0_6 = arith.constant 0 : index
    %26 = vector.load %arg5[%c0_5, %c0_6] : memref<4x512xf32, #tpu.memory_space<vmem>>, vector<4x512xf32>
    %27 = vector.extract_strided_slice %26 {offsets = [0, 0], sizes = [1, 512], strides = [1, 1]} : vector<4x512xf32> to vector<1x512xf32>
    %28 = vector.extract_strided_slice %26 {offsets = [1, 0], sizes = [1, 512], strides = [1, 1]} : vector<4x512xf32> to vector<1x512xf32>
    %29 = vector.extract_strided_slice %26 {offsets = [2, 0], sizes = [1, 512], strides = [1, 1]} : vector<4x512xf32> to vector<1x512xf32>
    %30 = vector.extract_strided_slice %26 {offsets = [3, 0], sizes = [1, 512], strides = [1, 1]} : vector<4x512xf32> to vector<1x512xf32>
    %c1_i32 = arith.constant 1 : i32
    %31 = tpu.dynamic_rotate %24 by %c1_i32 dim 1 : vector<8x512xf32>, i32 -> vector<8x512xf32>
    %32 = vector.broadcast %27 : vector<1x512xf32> to vector<8x512xf32>
    %33 = arith.mulf %31, %32 : vector<8x512xf32>
    %c511_i32 = arith.constant 511 : i32
    %34 = tpu.dynamic_rotate %24 by %c511_i32 dim 1 : vector<8x512xf32>, i32 -> vector<8x512xf32>
    %35 = vector.broadcast %28 : vector<1x512xf32> to vector<8x512xf32>
    %36 = arith.mulf %34, %35 : vector<8x512xf32>
    %37 = vector.extract_strided_slice %25 {offsets = [0, 3], sizes = [8, 1], strides = [1, 1]} : vector<8x9xf32> to vector<8x1xf32>
    %38 = vector.broadcast %37 : vector<8x1xf32> to vector<8x512xf32>
    %39 = arith.mulf %33, %38 : vector<8x512xf32>
    %40 = vector.extract_strided_slice %25 {offsets = [0, 4], sizes = [8, 1], strides = [1, 1]} : vector<8x9xf32> to vector<8x1xf32>
    %41 = vector.broadcast %40 : vector<8x1xf32> to vector<8x512xf32>
    %42 = arith.mulf %24, %41 : vector<8x512xf32>
    %43 = arith.addf %39, %42 : vector<8x512xf32>
    %44 = vector.extract_strided_slice %25 {offsets = [0, 5], sizes = [8, 1], strides = [1, 1]} : vector<8x9xf32> to vector<8x1xf32>
    %45 = vector.broadcast %44 : vector<8x1xf32> to vector<8x512xf32>
    %46 = arith.mulf %36, %45 : vector<8x512xf32>
    %47 = arith.addf %43, %46 : vector<8x512xf32>
    %48 = vector.extract_strided_slice %25 {offsets = [0, 0], sizes = [8, 1], strides = [1, 1]} : vector<8x9xf32> to vector<8x1xf32>
    %49 = vector.broadcast %48 : vector<8x1xf32> to vector<8x512xf32>
    %50 = arith.mulf %33, %49 : vector<8x512xf32>
    %51 = vector.extract_strided_slice %25 {offsets = [0, 1], sizes = [8, 1], strides = [1, 1]} : vector<8x9xf32> to vector<8x1xf32>
    %52 = vector.broadcast %51 : vector<8x1xf32> to vector<8x512xf32>
    %53 = arith.mulf %24, %52 : vector<8x512xf32>
    %54 = arith.addf %50, %53 : vector<8x512xf32>
    %55 = vector.extract_strided_slice %25 {offsets = [0, 2], sizes = [8, 1], strides = [1, 1]} : vector<8x9xf32> to vector<8x1xf32>
    %56 = vector.broadcast %55 : vector<8x1xf32> to vector<8x512xf32>
    %57 = arith.mulf %36, %56 : vector<8x512xf32>
    %58 = arith.addf %54, %57 : vector<8x512xf32>
    %c16_i32 = arith.constant 16 : i32
    %59 = tpu.dynamic_rotate %58 by %c16_i32 dim 1 : vector<8x512xf32>, i32 -> vector<8x512xf32>
    %60 = vector.broadcast %29 : vector<1x512xf32> to vector<8x512xf32>
    %61 = arith.mulf %59, %60 : vector<8x512xf32>
    %62 = arith.addf %47, %61 : vector<8x512xf32>
    %63 = vector.extract_strided_slice %25 {offsets = [0, 6], sizes = [8, 1], strides = [1, 1]} : vector<8x9xf32> to vector<8x1xf32>
    %64 = vector.broadcast %63 : vector<8x1xf32> to vector<8x512xf32>
    %65 = arith.mulf %33, %64 : vector<8x512xf32>
    %66 = vector.extract_strided_slice %25 {offsets = [0, 7], sizes = [8, 1], strides = [1, 1]} : vector<8x9xf32> to vector<8x1xf32>
    %67 = vector.broadcast %66 : vector<8x1xf32> to vector<8x512xf32>
    %68 = arith.mulf %24, %67 : vector<8x512xf32>
    %69 = arith.addf %65, %68 : vector<8x512xf32>
    %70 = vector.extract_strided_slice %25 {offsets = [0, 8], sizes = [8, 1], strides = [1, 1]} : vector<8x9xf32> to vector<8x1xf32>
    %71 = vector.broadcast %70 : vector<8x1xf32> to vector<8x512xf32>
    %72 = arith.mulf %36, %71 : vector<8x512xf32>
    %73 = arith.addf %69, %72 : vector<8x512xf32>
    %c496_i32 = arith.constant 496 : i32
    %74 = tpu.dynamic_rotate %73 by %c496_i32 dim 1 : vector<8x512xf32>, i32 -> vector<8x512xf32>
    %75 = vector.broadcast %30 : vector<1x512xf32> to vector<8x512xf32>
    %76 = arith.mulf %74, %75 : vector<8x512xf32>
    %77 = arith.addf %62, %76 : vector<8x512xf32>
    %78 = vector.extract_strided_slice %77 {offsets = [0, 0], sizes = [4, 512], strides = [1, 1]} : vector<8x512xf32> to vector<4x512xf32>
    %79 = vector.extract_strided_slice %77 {offsets = [4, 0], sizes = [4, 512], strides = [1, 1]} : vector<8x512xf32> to vector<4x512xf32>
    %cst = arith.constant 5.000000e-01 : f32
    %80 = vector.broadcast %cst : f32 to vector<4x512xf32>
    %81 = arith.mulf %80, %78 : vector<4x512xf32>
    %cst_7 = arith.constant 0.707106769 : f32
    %82 = vector.broadcast %cst_7 : f32 to vector<4x512xf32>
    %83 = arith.mulf %78, %82 : vector<4x512xf32>
    %84 = math.absf %83 : vector<4x512xf32>
    %cst_8 = arith.constant 5.000000e-01 : f32
    %85 = vector.broadcast %cst_8 : f32 to vector<4x512xf32>
    %86 = arith.mulf %85, %84 : vector<4x512xf32>
    %cst_9 = arith.constant 1.000000e+00 : f32
    %87 = vector.broadcast %cst_9 : f32 to vector<4x512xf32>
    %88 = arith.addf %87, %86 : vector<4x512xf32>
    %cst_10 = arith.constant 1.000000e+00 : f32
    %89 = vector.broadcast %cst_10 : f32 to vector<4x512xf32>
    %90 = arith.divf %89, %88 : vector<4x512xf32>
    %cst_11 = arith.constant 0.170872763 : f32
    %91 = vector.broadcast %cst_11 : f32 to vector<4x512xf32>
    %92 = arith.mulf %90, %91 : vector<4x512xf32>
    %cst_12 = arith.constant -0.822152256 : f32
    %93 = vector.broadcast %cst_12 : f32 to vector<4x512xf32>
    %94 = arith.addf %93, %92 : vector<4x512xf32>
    %95 = arith.mulf %90, %94 : vector<4x512xf32>
    %cst_13 = arith.constant 1.48851585 : f32
    %96 = vector.broadcast %cst_13 : f32 to vector<4x512xf32>
    %97 = arith.addf %96, %95 : vector<4x512xf32>
    %98 = arith.mulf %90, %97 : vector<4x512xf32>
    %cst_14 = arith.constant -1.13520396 : f32
    %99 = vector.broadcast %cst_14 : f32 to vector<4x512xf32>
    %100 = arith.addf %99, %98 : vector<4x512xf32>
    %101 = arith.mulf %90, %100 : vector<4x512xf32>
    %cst_15 = arith.constant 0.278868079 : f32
    %102 = vector.broadcast %cst_15 : f32 to vector<4x512xf32>
    %103 = arith.addf %102, %101 : vector<4x512xf32>
    %104 = arith.mulf %90, %103 : vector<4x512xf32>
    %cst_16 = arith.constant -0.186288059 : f32
    %105 = vector.broadcast %cst_16 : f32 to vector<4x512xf32>
    %106 = arith.addf %105, %104 : vector<4x512xf32>
    %107 = arith.mulf %90, %106 : vector<4x512xf32>
    %cst_17 = arith.constant 0.0967841818 : f32
    %108 = vector.broadcast %cst_17 : f32 to vector<4x512xf32>
    %109 = arith.addf %108, %107 : vector<4x512xf32>
    %110 = arith.mulf %90, %109 : vector<4x512xf32>
    %cst_18 = arith.constant 0.374091953 : f32
    %111 = vector.broadcast %cst_18 : f32 to vector<4x512xf32>
    %112 = arith.addf %111, %110 : vector<4x512xf32>
    %113 = arith.mulf %90, %112 : vector<4x512xf32>
    %cst_19 = arith.constant 1.00002372 : f32
    %114 = vector.broadcast %cst_19 : f32 to vector<4x512xf32>
    %115 = arith.addf %114, %113 : vector<4x512xf32>
    %116 = arith.mulf %90, %115 : vector<4x512xf32>
    %cst_20 = arith.constant -1.26551223 : f32
    %117 = vector.broadcast %cst_20 : f32 to vector<4x512xf32>
    %118 = arith.addf %117, %116 : vector<4x512xf32>
    %cst_21 = arith.constant 0.000000e+00 : f32
    %119 = vector.broadcast %cst_21 : f32 to vector<4x512xf32>
    %120 = arith.subf %119, %84 : vector<4x512xf32>
    %121 = arith.mulf %120, %84 : vector<4x512xf32>
    %122 = arith.addf %121, %118 : vector<4x512xf32>
    %123 = math.exp %122 : vector<4x512xf32>
    %124 = arith.mulf %90, %123 : vector<4x512xf32>
    %cst_22 = arith.constant 0.000000e+00 : f32
    %125 = vector.broadcast %cst_22 : f32 to vector<4x512xf32>
    %126 = arith.cmpf oge, %83, %125 : vector<4x512xf32>
    %cst_23 = arith.constant 1.000000e+00 : f32
    %127 = vector.broadcast %cst_23 : f32 to vector<4x512xf32>
    %128 = arith.subf %127, %124 : vector<4x512xf32>
    %cst_24 = arith.constant 1.000000e+00 : f32
    %129 = vector.broadcast %cst_24 : f32 to vector<4x512xf32>
    %130 = arith.subf %124, %129 : vector<4x512xf32>
    %131 = arith.select %126, %128, %130 : vector<4x512xi1>, vector<4x512xf32>
    %cst_25 = arith.constant 1.000000e+00 : f32
    %132 = vector.broadcast %cst_25 : f32 to vector<4x512xf32>
    %133 = arith.addf %132, %131 : vector<4x512xf32>
    %134 = arith.mulf %81, %133 : vector<4x512xf32>
    %135 = arith.mulf %134, %79 : vector<4x512xf32>
    %c0_26 = arith.constant 0 : index
    %c0_27 = arith.constant 0 : index
    %136 = vector.load %arg4[%c0_26, %c0_27] : memref<4x4xf32, #tpu.memory_space<vmem>>, vector<4x4xf32>
    %137 = vector.extract_strided_slice %136 {offsets = [0, 0], sizes = [4, 1], strides = [1, 1]} : vector<4x4xf32> to vector<4x1xf32>
    %138 = vector.extract_strided_slice %135 {offsets = [0, 0], sizes = [1, 512], strides = [1, 1]} : vector<4x512xf32> to vector<1x512xf32>
    %139 = vector.broadcast %137 : vector<4x1xf32> to vector<4x512xf32>
    %140 = vector.broadcast %138 : vector<1x512xf32> to vector<4x512xf32>
    %141 = arith.mulf %139, %140 : vector<4x512xf32>
    %142 = vector.extract_strided_slice %136 {offsets = [0, 1], sizes = [4, 1], strides = [1, 1]} : vector<4x4xf32> to vector<4x1xf32>
    %143 = vector.extract_strided_slice %135 {offsets = [1, 0], sizes = [1, 512], strides = [1, 1]} : vector<4x512xf32> to vector<1x512xf32>
    %144 = vector.broadcast %142 : vector<4x1xf32> to vector<4x512xf32>
    %145 = vector.broadcast %143 : vector<1x512xf32> to vector<4x512xf32>
    %146 = arith.mulf %144, %145 : vector<4x512xf32>
    %147 = arith.addf %141, %146 : vector<4x512xf32>
    %148 = vector.extract_strided_slice %136 {offsets = [0, 2], sizes = [4, 1], strides = [1, 1]} : vector<4x4xf32> to vector<4x1xf32>
    %149 = vector.extract_strided_slice %135 {offsets = [2, 0], sizes = [1, 512], strides = [1, 1]} : vector<4x512xf32> to vector<1x512xf32>
    %150 = vector.broadcast %148 : vector<4x1xf32> to vector<4x512xf32>
    %151 = vector.broadcast %149 : vector<1x512xf32> to vector<4x512xf32>
    %152 = arith.mulf %150, %151 : vector<4x512xf32>
    %153 = arith.addf %147, %152 : vector<4x512xf32>
    %154 = vector.extract_strided_slice %136 {offsets = [0, 3], sizes = [4, 1], strides = [1, 1]} : vector<4x4xf32> to vector<4x1xf32>
    %155 = vector.extract_strided_slice %135 {offsets = [3, 0], sizes = [1, 512], strides = [1, 1]} : vector<4x512xf32> to vector<1x512xf32>
    %156 = vector.broadcast %154 : vector<4x1xf32> to vector<4x512xf32>
    %157 = vector.broadcast %155 : vector<1x512xf32> to vector<4x512xf32>
    %158 = arith.mulf %156, %157 : vector<4x512xf32>
    %159 = arith.addf %153, %158 : vector<4x512xf32>
    %c0_28 = arith.constant 0 : index
    %c0_29 = arith.constant 0 : index
    %160 = vector.load %arg6[%c0_28, %c0_29] : memref<4x512xf32, #tpu.memory_space<vmem>>, vector<4x512xf32>
    tpu.vector_store %arg6[%c0_28, %c0_29], %159 {strides = array<i32>} : memref<4x512xf32, #tpu.memory_space<vmem>>, vector<4x512xf32>,
    return
  }
  func.func @transform_0(%arg0: i32) -> (i32, i32) {
    %c0_i32 = arith.constant 0 : i32
    %c0_i32_0 = arith.constant 0 : i32
    return %c0_i32, %arg0 : i32, i32
  }
  func.func @transform_1(%arg0: i32) -> (i32, i32) {
    %c0_i32 = arith.constant 0 : i32
    %c0_i32_0 = arith.constant 0 : i32
    %c0_i32_1 = arith.constant 0 : i32
    return %c0_i32, %c0_i32_0 : i32, i32
  }
  func.func @transform_2(%arg0: i32) -> (i32, i32) {
    %c0_i32 = arith.constant 0 : i32
    %c0_i32_0 = arith.constant 0 : i32
    %c0_i32_1 = arith.constant 0 : i32
    return %c0_i32, %c0_i32_0 : i32, i32
  }
  func.func @transform_3(%arg0: i32) -> (i32, i32) {
    %c0_i32 = arith.constant 0 : i32
    %c0_i32_0 = arith.constant 0 : i32
    %c0_i32_1 = arith.constant 0 : i32
    return %c0_i32, %c0_i32_0 : i32, i32
  }
  func.func @transform_4(%arg0: i32) -> (i32, i32) {
    %c0_i32 = arith.constant 0 : i32
    %c0_i32_0 = arith.constant 0 : i32
    return %c0_i32, %arg0 : i32, i32
  }
  func.func @transform_5(%arg0: i32) -> (i32, i32) {
    %c0_i32 = arith.constant 0 : i32
    %c0_i32_0 = arith.constant 0 : i32
    return %c0_i32, %arg0 : i32, i32
  }
}

</mosaic_0001>

<bundles_post_ra>
// kernel: tpu_custom_call.1
= control target key start
LH: loop header
LB: loop body
LE: loop exit
PB: predicated region body
PF: predicated region fallthrough
CT: control target
= control target key end

     0   :  { %10 = vsyncpa [#allocation3], 0  ;;  %s1141_s0 = inlined_call_operand.hbm [shape: f32[4,512], index: 0, kind: input, shape index: {}]   ;;  %s1142_s1 = inlined_call_operand.vmem [shape: f32[8,4], index: 1, kind: input, shape index: {}]   ;;  %s1143_s2 = inlined_call_operand.vmem [shape: f32[8,9], index: 2, kind: input, shape index: {}]   ;;  %s1144_s3 = inlined_call_operand.vmem [shape: f32[4,4], index: 3, kind: input, shape index: {}]   ;;  %s1145_s4 = inlined_call_operand.hbm [shape: f32[4,512], index: 4, kind: input, shape index: {}]   ;;  %s1146_s5 = inlined_call_operand.hbm [shape: f32[4,512], index: 5, kind: output, shape index: {}]  }
   0x1   :  { %11 = vsyncpa [#allocation6], 0 }
   0x2   :  { %12 = vsyncpa [#allocation4], 0  ;;  %s18_s20 = sshll.u32 %s1141_s0, 4  ;;  %s816_s21 = smov [#allocation2]   ;;  %s19_s20 = int_to_ptr.hbm [resolvable:$true] %s18_s20 }
   0x3   :  { %s20_s22 = sshll.u32 %s816_s21, 4  ;;  %s35_s25 = sshll.u32 %s1145_s4, 4  ;;  %s21_s22 = int_to_ptr.vmem [resolvable:$true] %s20_s22  ;;  %s36_s25 = int_to_ptr.hbm [resolvable:$true] %s35_s25 }
   0x4   :  { %23 = dma.hbm_to_vmem [thread:$0]  %s19_s20, 256, %s21_s22, [#allocation3]  }
   0x5   :  { %s817_s26 = smov [#allocation5]  }
   0x6   :  { %s37_s27 = sshll.u32 %s817_s26, 4  ;;  %s38_s27 = int_to_ptr.vmem [resolvable:$true] %s37_s27 }
   0x7   :  { %40 = dma.hbm_to_vmem [thread:$0]  %s36_s25, 256, %s38_s27, [#allocation6]  }
   0x8   :  { %810 = dma.done.wait [#allocation3], 256  }
   0x9   :  { %811 = vsyncadd [#allocation3], 4294967040 }
   0xa   :  { %812 = dma.done.wait [#allocation6], 256  }
   0xb   :  { %813 = vsyncadd [#allocation6], 4294967040  ;;  %v818_v0 = vmov 0   ;;  %v819_v1 = vmov 2   ;;  %v820_v2 = vmov 1   ;;  %v49_v3 = vld [vmem:[%s1142_s1] sm:$0xff] }
   0xc   :  { %704 = vset.pattern.permute.xlu0 %v818_v0  ;;  %706 = vset.pattern.permute.xlu1 %v819_v1  ;;  %v877_v4 = vld [vmem:[%s1143_s2] sm:$0xff]  ;;  %v821_v5 = vmov 3   ;;  %v822_v6 = vmov 6   ;;  %v51_v8 = vld [vmem:[#allocation2 + $0x8] sm:$0xff]  ;;  %v823_v57 = vmov 7   ;;  %s824_s1 = smov 1  }
   0xd   :  { %709 = vset.pattern.permute.xlu2 %v820_v2  ;;  %54 = vperm.xlu0 %704, %v49_v3   ;;  %v50_v7 = vld [vmem:[#allocation2] sm:$0xff]  ;;  %v61_v12 = vperm.slane %v51_v8, 0  ;;  %v81_v14 = vperm.slane %v51_v8, 1  ;;  %v105_v16 = vperm.slane %v51_v8, 2  ;;  %v129_v20 = vperm.slane %v51_v8, 3  ;;  %s825_s2 = smov 127  }
   0xe   :  { %100 = vperm.xlu1 %706, %v49_v3   ;;  %254 = vperm.xlu2 %709, %v877_v4   ;;  %v59_v11 = vperm.slane %v50_v7, 0  ;;  %v79_v13 = vperm.slane %v50_v7, 1  ;;  %v103_v15 = vperm.slane %v50_v7, 2  ;;  %v80_v17 = vperm.slane %v50_v7, 5  ;;  %s829_s30 = smov 16   ;;  %s830_s6 = smov 112  }
   0xf   :  { %v60_v18 = vperm.slane %v50_v7, 4  ;;  %v127_v19 = vperm.slane %v50_v7, 3  ;;  %v62_v21 = vperm.slane %v51_v8, 4  ;;  %v82_v22 = vperm.slane %v51_v8, 5  ;;  %s673_s12 = sshll.u32 %s1146_s5, 4  ;;  %s674_s12 = int_to_ptr.hbm [resolvable:$true] %s673_s12 }
  0x10   :  { %v67_v23 = vperm.slane %v59_v11, 0  ;;  %v69_v24 = vperm.slane %v61_v12, 0  ;;  %v87_v25 = vperm.slane %v79_v13, 1  ;;  %v89_v26 = vperm.slane %v81_v14, 1 }
  0x11   :  { %v111_v27 = vperm.slane %v103_v15, 2  ;;  %v113_v28 = vperm.slane %v105_v16, 2  ;;  %v88_v29 = vperm.slane %v80_v17, 1  ;;  %v68_v30 = vperm.slane %v60_v18, 0 }
  0x12   :  { %v135_v31 = vperm.slane %v127_v19, 3  ;;  %v137_v32 = vperm.slane %v129_v20, 3  ;;  %v70_v33 = vperm.slane %v62_v21, 0  ;;  %v104_v34 = vperm.slane %v50_v7, 6 }
  0x13   :  { %v106_v35 = vperm.slane %v51_v8, 6  ;;  %v90_v36 = vperm.slane %v82_v22, 1  ;;  %v128_v46 = vperm.slane %v50_v7, 7  ;;  %v130_v52 = vperm.slane %v51_v8, 7 }
  0x14   :  { %v112_v54 = vperm.slane %v104_v34, 2  ;;  %v827_v16 = vmov 4   ;;  %v828_v17 = vmov 5   ;;  %v158_v22 = vlaneseq }
  0x15   :  { %705 = vset.pattern.permute.xlu0 %v820_v2  ;;  %v114_v59 = vperm.slane %v106_v35, 2  ;;  %v136_v61 = vperm.slane %v128_v46, 3 }
  0x16   :  { %707 = vset.pattern.permute.xlu1 %v821_v5  ;;  %76 = vperm.xlu0 %705, %v49_v3  }
  0x17   :  { %124 = vperm.xlu1 %707, %v49_v3   ;;  %712 = vset.pattern.permute.xlu2 %v823_v57 }
  0x1e   :  { %710 = vset.pattern.permute.xlu0 %v819_v1 }
  0x1f   :  { %708 = vset.pattern.permute.xlu1 %v818_v0 }
  0x20   :  { %246 = vperm.xlu1 %708, %v877_v4  }
  0x28   :  { %711 = vset.pattern.permute.xlu1 %v822_v6  ;;  %v138_v6 = vperm.slane %v130_v52, 3 }
  0x68   :  { %v912_v18 = vpop.permute.xlu2 %254 }
  0x7f   :  { %v55_v9 = vpop.permute.xlu0 %54 }
  0x80   :  { %v101_v10 = vpop.permute.xlu1 %100  ;;  %v71_v39 = vmul.f32 %v67_v23, %v55_v9  ;;  %v73_v40 = vmul.f32 %v69_v24, %v55_v9  ;;  %v72_v53 = vmul.f32 %v68_v30, %v55_v9  ;;  %v74_v58 = vmul.f32 %v70_v33, %v55_v9  ;;  %v914_v23 = vld [vmem:[#allocation5] sm:$0xff] }
  0x81   :  { %v115_v43 = vmul.f32 %v111_v27, %v101_v10  ;;  %v117_v44 = vmul.f32 %v113_v28, %v101_v10  ;;  %v116_v7 = vmul.f32 %v112_v54, %v101_v10  ;;  %v118_v8 = vmul.f32 %v114_v59, %v101_v10 }
  0x82   :  { %v826_v10 = vmov 8   ;;  %v916_v24 = vand.u32 127, %v158_v22 }
  0x84   :  { %vm160_vm0 = vcmp.lt.s32.totalorder %v916_v24, 1  ;;  %vm191_vm1 = vcmp.lt.s32.totalorder %v916_v24, 127  ;;  %vm285_vm2 = vcmp.lt.s32.totalorder %v916_v24, 16  ;;  %vm350_vm3 = vcmp.lt.s32.totalorder %v916_v24, 112 }
  0x88   :  { %v77_v37 = vpop.permute.xlu0 %76 }
  0x89   :  { %v125_v38 = vpop.permute.xlu1 %124  ;;  %v91_v41 = vmul.f32 %v87_v25, %v77_v37  ;;  %v93_v42 = vmul.f32 %v89_v26, %v77_v37  ;;  %v92_v45 = vmul.f32 %v88_v29, %v77_v37  ;;  %v94_v51 = vmul.f32 %v90_v36, %v77_v37  ;;  %v918_v25 = vld [vmem:[#allocation5 + $0x8] sm:$0xff] }
  0x8a   :  { %v139_v49 = vmul.f32 %v135_v31, %v125_v38  ;;  %v141_v50 = vmul.f32 %v137_v32, %v125_v38  ;;  %v140_v11 = vmul.f32 %v136_v61, %v125_v38  ;;  %v142_v13 = vmul.f32 %v138_v6, %v125_v38 }
  0x8b   :  { %v95_v47 = vadd.f32 %v91_v41, %v71_v39  ;;  %v97_v48 = vadd.f32 %v93_v42, %v73_v40  ;;  %v96_v60 = vadd.f32 %v92_v45, %v72_v53  ;;  %v98_v3 = vadd.f32 %v94_v51, %v74_v58 }
  0x8c   :  { %v168_v26 = vperm.slane %v914_v23, 4  ;;  %v169_v33 = vperm.slane %v918_v25, 0  ;;  %v196_v36 = vperm.slane %v914_v23, 1  ;;  %v197_v37 = vperm.slane %v914_v23, 5 }
  0x8d   :  { %v119_v55 = vadd.f32 %v115_v43, %v95_v47  ;;  %v121_v56 = vadd.f32 %v117_v44, %v97_v48  ;;  %v120_v9 = vadd.f32 %v116_v7, %v96_v60  ;;  %v122_v12 = vadd.f32 %v118_v8, %v98_v3 }
  0x8e   :  { %v176_v28 = vperm.slane %v168_v26, 0  ;;  %v199_v39 = vperm.slane %v918_v25, 5  ;;  %v177_v44 = vperm.slane %v169_v33, 0  ;;  %v204_v46 = vperm.slane %v196_v36, 1 }
  0x8f   :  { %v885_v62 = vadd.f32 %v139_v49, %v119_v55  ;;  %v887_v63 = vadd.f32 %v141_v50, %v121_v56  ;;  %v892_v14 = vadd.f32 %v140_v11, %v120_v9  ;;  %v894_v15 = vadd.f32 %v142_v13, %v122_v12 }
  0x90   :  { %v205_v47 = vperm.slane %v197_v37, 1  ;;  %v207_v48 = vperm.slane %v199_v39, 1  ;;  %v198_v57 = vperm.slane %v918_v25, 1 }
  0x91   :  { %154 = vrot.lane.b32.xlu1 %v887_v63, %s824_s1  ;;  %183 = vrot.lane.b32.xlu0 %v885_v62, %s825_s2  ;;  %v257_v55 = vmul.f32 %v912_v18, %v885_v62  ;;  %v258_v56 = vmul.f32 %v912_v18, %v892_v14  ;;  %v260_v58 = vmul.f32 %v912_v18, %v894_v15 }
  0x92   :  { %150 = vrot.lane.b32.xlu2 %v885_v62, %s824_s1  ;;  %v247_v21 = vpop.permute.xlu1 %246 }
  0x99   :  { %185 = vrot.lane.b32.xlu1 %v892_v14, %s825_s2  ;;  %189 = vrot.lane.b32.xlu0 %v894_v15, %s825_s2 }
  0x9a   :  { %152 = vrot.lane.b32.xlu2 %v892_v14, %s824_s1 }
  0xa1   :  { %311 = vperm.xlu1 %711, %v877_v4   ;;  %266 = vperm.xlu0 %710, %v877_v4  }
  0xa2   :  { %156 = vrot.lane.b32.xlu2 %v894_v15, %s824_s1 }
  0xa9   :  { %713 = vset.pattern.permute.xlu1 %v826_v10  ;;  %715 = vset.pattern.permute.xlu0 %v827_v16  ;;  %v206_v16 = vperm.slane %v198_v57, 1 }
  0xaa   :  { %187 = vrot.lane.b32.xlu2 %v887_v63, %s825_s2  ;;  %331 = vperm.xlu1 %713, %v877_v4  }
  0xab   :  { %222 = vperm.xlu0 %715, %v877_v4  }
  0xb2   :  { %319 = vperm.xlu2 %712, %v877_v4   ;;  %716 = vset.pattern.permute.xlu1 %v828_v17 }
  0xb3   :  { %718 = vset.pattern.permute.xlu0 %v820_v2  ;;  %234 = vperm.xlu1 %716, %v877_v4  }
  0xba   :  { %714 = vset.pattern.permute.xlu2 %v821_v5 }
  0xbb   :  { %214 = vperm.xlu2 %714, %v877_v4   ;;  %719 = vset.pattern.permute.xlu1 %v819_v1  ;;  %v167_v1 = vperm.slane %v914_v23, 0 }
  0xbd   :  { %v175_v30 = vperm.slane %v167_v1, 0 }
  0xc3   :  { %717 = vset.pattern.permute.xlu2 %v818_v0  ;;  %v170_v0 = vperm.slane %v918_v25, 4 }
  0xc5   :  { %v178_v32 = vperm.slane %v170_v0, 0  ;;  %v259_v0 = vmul.f32 %v912_v18, %v887_v63 }
  0xec   :  { %v151_v19 = vpop.permute.xlu2 %150 }
  0xf4   :  { %v153_v20 = vpop.permute.xlu2 %152 }
  0xf5   :  { %v163_v29 = vsel %vm160_vm0, %v151_v19, %v153_v20 }
  0xf6   :  { %v931_v35 = vmul.f32 %v176_v28, %v163_v29 }
  0xf8   :  { %v250_v45 = vmul.f32 %v247_v21, %v931_v35 }
  0xfa   :  { %v262_v8 = vadd.f32 %v258_v56, %v250_v45 }
  0xfc   :  { %v157_v2 = vpop.permute.xlu2 %156 }
  0xfd   :  { %v164_v31 = vsel %vm160_vm0, %v157_v2, %v151_v19 }
  0xfe   :  { %v936_v40 = vmul.f32 %v175_v30, %v164_v31 }
 0x100   :  { %v249_v49 = vmul.f32 %v247_v21, %v936_v40 }
 0x102   :  { %v261_v9 = vadd.f32 %v257_v55, %v249_v49 }
 0x103   :  { %v155_v4 = vpop.permute.xlu1 %154  ;;  %v184_v27 = vpop.permute.xlu0 %183 }
 0x104   :  { %v161_v34 = vsel %vm160_vm0, %v155_v4, %v157_v2  ;;  %v188_v41 = vpop.permute.xlu2 %187  ;;  %v162_v53 = vsel %vm160_vm0, %v153_v20, %v155_v4 }
 0x105   :  { %v938_v43 = vmul.f32 %v178_v32, %v161_v34  ;;  %v181_v6 = vmul.f32 %v177_v44, %v162_v53 }
 0x107   :  { %v252_v54 = vmul.f32 %v247_v21, %v938_v43  ;;  %v251_v26 = vmul.f32 %v247_v21, %v181_v6 }
 0x109   :  { %v264_v10 = vadd.f32 %v260_v58, %v252_v54  ;;  %v263_v32 = vadd.f32 %v259_v0, %v251_v26 }
 0x10b   :  { %v186_v38 = vpop.permute.xlu1 %185  ;;  %v190_v42 = vpop.permute.xlu0 %189 }
 0x10c   :  { %v193_v50 = vsel %vm191_vm1, %v186_v38, %v188_v41  ;;  %v194_v51 = vsel %vm191_vm1, %v184_v27, %v186_v38  ;;  %v195_v52 = vsel %vm191_vm1, %v190_v42, %v184_v27  ;;  %v320_v17 = vpop.permute.xlu2 %319  ;;  %v192_v19 = vsel %vm191_vm1, %v188_v41, %v190_v42 }
 0x10d   :  { %v959_v59 = vmul.f32 %v204_v46, %v194_v51  ;;  %v961_v60 = vmul.f32 %v205_v47, %v193_v50  ;;  %v963_v61 = vmul.f32 %v207_v48, %v195_v52  ;;  %v210_v4 = vmul.f32 %v206_v16, %v192_v19 }
 0x10e   :  { %v322_v28 = vmul.f32 %v320_v17, %v885_v62  ;;  %v324_v29 = vmul.f32 %v320_v17, %v887_v63  ;;  %v323_v49 = vmul.f32 %v320_v17, %v892_v14  ;;  %v325_v50 = vmul.f32 %v320_v17, %v894_v15 }
 0x10f   :  { %v290_v16 = vperm.slane %v914_v23, 2 }
 0x113   :  { %v312_v3 = vpop.permute.xlu1 %311  ;;  %v267_v7 = vpop.permute.xlu0 %266 }
 0x114   :  { %v269_v11 = vmul.f32 %v267_v7, %v959_v59  ;;  %v270_v12 = vmul.f32 %v267_v7, %v961_v60  ;;  %v272_v13 = vmul.f32 %v267_v7, %v963_v61  ;;  %v314_v1 = vmul.f32 %v312_v3, %v936_v40 }
 0x115   :  { %v316_v27 = vmul.f32 %v312_v3, %v181_v6  ;;  %v271_v30 = vmul.f32 %v267_v7, %v210_v4  ;;  %v215_v38 = vpop.permute.xlu2 %214  ;;  %v315_v44 = vmul.f32 %v312_v3, %v931_v35  ;;  %v317_v18 = vmul.f32 %v312_v3, %v938_v43 }
 0x116   :  { %v276_v20 = vadd.f32 %v272_v13, %v264_v10  ;;  %v274_v22 = vadd.f32 %v270_v12, %v262_v8  ;;  %v273_v2 = vadd.f32 %v269_v11, %v261_v9  ;;  %v326_v37 = vadd.f32 %v322_v28, %v314_v1  ;;  %v591_v10 = vld [vmem:[%s1144_s3] sm:$0xf]  ;;  %s831_s3 = smov [#allocation7]  }
 0x117   :  { %v328_v36 = vadd.f32 %v324_v29, %v316_v27  ;;  %v275_v39 = vadd.f32 %v271_v30, %v263_v32  ;;  %v217_v51 = vmul.f32 %v215_v38, %v936_v40  ;;  %v218_v52 = vmul.f32 %v215_v38, %v931_v35  ;;  %s671_s9 = sshll.u32 %s831_s3, 4  ;;  %s672_s9 = int_to_ptr.vmem [resolvable:$true] %s671_s9 }
 0x118   :  { %283 = vrot.lane.b32.xlu0 %v276_v20, %s829_s30  ;;  %279 = vrot.lane.b32.xlu1 %v274_v22, %s829_s30  ;;  %v219_v53 = vmul.f32 %v215_v38, %v181_v6  ;;  %v327_v55 = vadd.f32 %v323_v49, %v315_v44  ;;  %v329_v56 = vadd.f32 %v325_v50, %v317_v18  ;;  %v356_v22 = vperm.slane %v914_v23, 7 }
 0x119   :  { %277 = vrot.lane.b32.xlu2 %v273_v2, %s829_s30  ;;  %v298_v2 = vperm.slane %v290_v16, 2  ;;  %v293_v1 = vperm.slane %v918_v25, 6  ;;  %v292_v27 = vperm.slane %v918_v25, 2  ;;  %v358_v18 = vperm.slane %v918_v25, 7 }
 0x11a   :  { %v364_v28 = vperm.slane %v356_v22, 3 }
 0x11c   :  { %v332_v31 = vpop.permute.xlu1 %331 }
 0x11d   :  { %v334_v21 = vmul.f32 %v332_v31, %v959_v59  ;;  %v336_v33 = vmul.f32 %v332_v31, %v210_v4  ;;  %v223_v34 = vpop.permute.xlu0 %222  ;;  %v335_v54 = vmul.f32 %v332_v31, %v961_v60 }
 0x11e   :  { %v225_v45 = vmul.f32 %v223_v34, %v885_v62  ;;  %v226_v46 = vmul.f32 %v223_v34, %v892_v14  ;;  %v227_v47 = vmul.f32 %v223_v34, %v887_v63  ;;  %v228_v48 = vmul.f32 %v223_v34, %v894_v15 }
 0x11f   :  { %v340_v41 = vadd.f32 %v336_v33, %v328_v36  ;;  %v338_v42 = vadd.f32 %v334_v21, %v326_v37  ;;  %v220_v62 = vmul.f32 %v215_v38, %v938_v43  ;;  %v337_v63 = vmul.f32 %v332_v31, %v963_v61 }
 0x120   :  { %v229_v57 = vadd.f32 %v225_v45, %v217_v51  ;;  %v230_v58 = vadd.f32 %v226_v46, %v218_v52  ;;  %v231_v3 = vadd.f32 %v227_v47, %v219_v53  ;;  %v339_v8 = vadd.f32 %v335_v54, %v327_v55 }
 0x121   :  { %281 = vrot.lane.b32.xlu2 %v275_v39, %s829_s30  ;;  %346 = vrot.lane.b32.xlu0 %v340_v41, %s830_s6  ;;  %v232_v14 = vadd.f32 %v228_v48, %v220_v62  ;;  %v341_v43 = vadd.f32 %v337_v63, %v329_v56  ;;  %v301_v21 = vperm.slane %v293_v1, 2  ;;  %v300_v33 = vperm.slane %v292_v27, 2 }
 0x122   :  { %342 = vrot.lane.b32.xlu1 %v338_v42, %s830_s6  ;;  %v357_v39 = vperm.slane %v918_v25, 3  ;;  %v366_v53 = vperm.slane %v358_v18, 3 }
 0x124   :  { %v365_v52 = vperm.slane %v357_v39, 3 }
 0x125   :  { %v235_v7 = vpop.permute.xlu1 %234 }
 0x126   :  { %v237_v15 = vmul.f32 %v235_v7, %v959_v59  ;;  %v238_v40 = vmul.f32 %v235_v7, %v961_v60  ;;  %v239_v35 = vmul.f32 %v235_v7, %v210_v4  ;;  %v240_v6 = vmul.f32 %v235_v7, %v963_v61 }
 0x127   :  { %v291_v61 = vperm.slane %v914_v23, 6 }
 0x128   :  { %v241_v9 = vadd.f32 %v237_v15, %v229_v57  ;;  %v244_v11 = vadd.f32 %v240_v6, %v232_v14  ;;  %v242_v12 = vadd.f32 %v238_v40, %v230_v58  ;;  %v243_v13 = vadd.f32 %v239_v35, %v231_v3 }
 0x129   :  { %344 = vrot.lane.b32.xlu2 %v339_v8, %s830_s6  ;;  %606 = vperm.xlu0 %718, %v591_v10   ;;  %v299_v20 = vperm.slane %v291_v61, 2 }
 0x12a   :  { %348 = vrot.lane.b32.xlu1 %v341_v43, %s830_s6 }
 0x131   :  { %594 = vperm.xlu2 %717, %v591_v10   ;;  %721 = vset.pattern.permute.xlu0 %v821_v5 }
 0x132   :  { %622 = vperm.xlu1 %719, %v591_v10  }
 0x139   :  { %720 = vset.pattern.permute.xlu2 %v821_v5  ;;  %v355_v5 = vperm.slane %v914_v23, 3 }
 0x13a   :  { %638 = vperm.xlu2 %720, %v591_v10  }
 0x13b   :  { %v363_v30 = vperm.slane %v355_v5, 3 }
 0x173   :  { %v278_v59 = vpop.permute.xlu2 %277 }
 0x17b   :  { %v282_v60 = vpop.permute.xlu2 %281 }
 0x183   :  { %v345_v31 = vpop.permute.xlu2 %344 }
 0x18a   :  { %v284_v17 = vpop.permute.xlu0 %283  ;;  %v280_v19 = vpop.permute.xlu1 %279 }
 0x18b   :  { %v288_v26 = vsel %vm285_vm2, %v278_v59, %v280_v19  ;;  %v289_v4 = vsel %vm285_vm2, %v284_v17, %v278_v59  ;;  %v286_v41 = vsel %vm285_vm2, %v282_v60, %v284_v17  ;;  %v287_v45 = vsel %vm285_vm2, %v280_v19, %v282_v60 }
 0x18c   :  { %v303_v0 = vmul.f32 %v299_v20, %v288_v26  ;;  %v302_v29 = vmul.f32 %v298_v2, %v289_v4  ;;  %v305_v48 = vmul.f32 %v301_v21, %v286_v41  ;;  %v304_v50 = vmul.f32 %v300_v33, %v287_v45 }
 0x18e   :  { %v307_v36 = vadd.f32 %v303_v0, %v242_v12  ;;  %v306_v42 = vadd.f32 %v302_v29, %v241_v9  ;;  %v309_v63 = vadd.f32 %v305_v48, %v244_v11  ;;  %v308_v58 = vadd.f32 %v304_v50, %v243_v13 }
 0x193   :  { %v347_v32 = vpop.permute.xlu0 %346 }
 0x194   :  { %v352_v23 = vsel %vm350_vm3, %v345_v31, %v347_v32  ;;  %v343_v34 = vpop.permute.xlu1 %342 }
 0x195   :  { %v368_v37 = vmul.f32 %v364_v28, %v352_v23  ;;  %v353_v38 = vsel %vm350_vm3, %v343_v34, %v345_v31 }
 0x196   :  { %v367_v44 = vmul.f32 %v363_v30, %v353_v38 }
 0x197   :  { %v1019_v46 = vadd.f32 %v368_v37, %v307_v36 }
 0x198   :  { %v1021_v47 = vadd.f32 %v367_v44, %v306_v42 }
 0x199   :  { %v1024_v49 = vmul.f32 0.70710677, %v1019_v46 }
 0x19a   :  { %v1027_v51 = vmul.f32 0.70710677, %v1021_v47 }
 0x19b   :  { %v1030_v62 = vand.u32 2147483647, %v1024_v49 }
 0x19c   :  { %v1033_v25 = vand.u32 2147483647, %v1027_v51  ;;  %v349_v54 = vpop.permute.xlu1 %348 }
 0x19d   :  { %v388_v55 = vmul.f32 0.5, %v1030_v62  ;;  %v351_v56 = vsel %vm350_vm3, %v347_v32, %v349_v54  ;;  %v354_v57 = vsel %vm350_vm3, %v349_v54, %v343_v34 }
 0x19e   :  { %v387_v3 = vmul.f32 0.5, %v1033_v25  ;;  %v369_v14 = vmul.f32 %v365_v52, %v351_v56  ;;  %v370_v7 = vmul.f32 %v366_v53, %v354_v57 }
 0x19f   :  { %v392_v15 = vadd.f32 1.0, %v388_v55 }
 0x1a0   :  { %v391_v40 = vadd.f32 1.0, %v387_v3  ;;  %v1041_v35 = vadd.f32 %v369_v14, %v308_v58  ;;  %v1043_v6 = vadd.f32 %v370_v7, %v309_v63 }
 0x1a1   :  { %722 = vrcp.f32 %v392_v15  ;;  %v419_v19 = vand.u32 2147483647, %v392_v15  ;;  %v421_v20 = vand.u32 2147483648, %v392_v15  ;;  %vm415_vm6 = vweird.f32 %v392_v15 }
 0x1a2   :  { %724 = vrcp.f32 %v391_v40  ;;  %v1046_v8 = vmul.f32 0.70710677, %v1041_v35  ;;  %v1049_v43 = vmul.f32 0.70710677, %v1043_v6  ;;  %v406_v26 = vand.u32 2147483648, %v391_v40 }
 0x1a3   :  { %v404_v4 = vand.u32 2147483647, %v391_v40  ;;  %v422_v27 = vor.u32 1.1754944e-38, %v421_v20  ;;  %vm400_vm8 = vweird.f32 %v391_v40  ;;  %vm420_vm9 = vcmp.eq.f32.partialorder %v419_v19, 8.507059e+37 }
 0x1a4   :  { %v1052_v24 = vand.u32 2147483647, %v1046_v8  ;;  %v1055_v9 = vand.u32 2147483647, %v1049_v43  ;;  %v407_v29 = vor.u32 1.1754944e-38, %v406_v26 }
 0x1a5   :  { %vm405_vm11 = vcmp.eq.f32.partialorder %v404_v4, 8.507059e+37 }
 0x1a6   :  { %v389_v10 = vmul.f32 0.5, %v1052_v24  ;;  %v390_v59 = vmul.f32 0.5, %v1055_v9 }
 0x1a7   :  { %v723_v11 = vpop.eup %722 }
 0x1a8   :  { %v725_v12 = vpop.eup %724  ;;  %v411_v13 = vmul.f32 %v723_v11, %v392_v15  ;;  %v393_v16 = vadd.f32 1.0, %v389_v10  ;;  %v1059_v17 = vadd.f32 1.0, %v390_v59  ;;  %vm416_vm4 = vweird.f32 %v723_v11 }
 0x1a9   :  { %v396_v60 = vmul.f32 %v725_v12, %v391_v40  ;;  %vm401_vm5 = vweird.f32 %v725_v12  ;;  %vm417_vm7 = vmor %vm415_vm6, %vm416_vm4  ;;  %vm552_vm4 = vcmp.ge.f32.partialorder %v1024_v49, 0.0  ;;  %vm553_vm6 = vcmp.ge.f32.partialorder %v1046_v8, 0.0 }
 0x1aa   :  { %v412_v61 = vsub.f32 1.0, %v411_v13  ;;  %726 = vrcp.f32 %v393_v16  ;;  %vm402_vm10 = vmor %vm400_vm8, %vm401_vm5  ;;  %v434_v44 = vand.u32 2147483647, %v393_v16  ;;  %v436_v18 = vand.u32 2147483648, %v393_v16 }
 0x1ab   :  { %v397_v22 = vsub.f32 1.0, %v396_v60  ;;  %728 = vrcp.f32 %v1059_v17  ;;  %v451_v52 = vand.u32 2147483648, %v1059_v17  ;;  %v449_v63 = vand.u32 2147483647, %v1059_v17 }
 0x1ac   :  { %v413_v2 = vmul.f32 %v723_v11, %v412_v61  ;;  %vm430_vm14 = vweird.f32 %v393_v16  ;;  %v437_v58 = vor.u32 1.1754944e-38, %v436_v18  ;;  %vm445_vm0 = vweird.f32 %v1059_v17 }
 0x1ad   :  { %v398_v5 = vmul.f32 %v725_v12, %v397_v22  ;;  %vm435_vm1 = vcmp.eq.f32.partialorder %v434_v44, 8.507059e+37  ;;  %v452_v15 = vor.u32 1.1754944e-38, %v451_v52  ;;  %vm450_vm3 = vcmp.eq.f32.partialorder %v449_v63, 8.507059e+37 }
 0x1ae   :  { %v414_v1 = vadd.f32 %v723_v11, %v413_v2  ;;  %vm551_vm5 = vcmp.ge.f32.partialorder %v1027_v51, 0.0  ;;  %v607_v51 = vpop.permute.xlu0 %606  ;;  %vm659_vm8 = vcmask 1043456  }
 0x1af   :  { %v399_v0 = vadd.f32 %v725_v12, %v398_v5 }
 0x1b0   :  { %v418_v28 = vsel %vm417_vm7, %v723_v11, %v414_v1  ;;  %v727_v32 = vpop.eup %726  ;;  %vm554_vm7 = vcmp.ge.f32.partialorder %v1049_v43, 0.0  ;;  %v582_v43 = vrot.slane %v1043_v6, 4 }
 0x1b1   :  { %v1062_v30 = vsel %vm420_vm9, %v422_v27, %v418_v28  ;;  %v403_v31 = vsel %vm402_vm10, %v725_v12, %v399_v0  ;;  %v729_v23 = vpop.eup %728  ;;  %v426_v36 = vmul.f32 %v727_v32, %v393_v16  ;;  %vm431_vm12 = vweird.f32 %v727_v32 }
 0x1b2   :  { %v456_v21 = vmul.f32 0.17087276, %v1062_v30  ;;  %v1065_v33 = vsel %vm405_vm11, %v407_v29, %v403_v31  ;;  %v441_v38 = vmul.f32 %v729_v23, %v1059_v17  ;;  %vm446_vm13 = vweird.f32 %v729_v23  ;;  %vm432_vm15 = vmor %vm430_vm14, %vm431_vm12 }
 0x1b3   :  { %v455_v34 = vmul.f32 0.17087276, %v1065_v33  ;;  %v427_v41 = vsub.f32 1.0, %v426_v36  ;;  %vm447_vm2 = vmor %vm445_vm0, %vm446_vm13 }
 0x1b4   :  { %v460_v37 = vadd.f32 -0.82215226, %v456_v21  ;;  %v442_v45 = vsub.f32 1.0, %v441_v38 }
 0x1b5   :  { %v459_v39 = vadd.f32 -0.82215226, %v455_v34  ;;  %v428_v50 = vmul.f32 %v727_v32, %v427_v41 }
 0x1b6   :  { %v464_v42 = vmul.f32 %v460_v37, %v1062_v30  ;;  %v443_v54 = vmul.f32 %v729_v23, %v442_v45 }
 0x1b7   :  { %v463_v48 = vmul.f32 %v459_v39, %v1065_v33  ;;  %v429_v56 = vadd.f32 %v727_v32, %v428_v50 }
 0x1b8   :  { %v468_v53 = vadd.f32 1.4885159, %v464_v42  ;;  %v444_v3 = vadd.f32 %v729_v23, %v443_v54 }
 0x1b9   :  { %v467_v55 = vadd.f32 1.4885159, %v463_v48  ;;  %v433_v7 = vsel %vm432_vm15, %v727_v32, %v429_v56  ;;  %v528_v56 = vsub.f32 0.0, %v1030_v62 }
 0x1ba   :  { %v472_v57 = vmul.f32 %v468_v53, %v1062_v30  ;;  %v1076_v11 = vsel %vm435_vm1, %v437_v58, %v433_v7  ;;  %v448_v12 = vsel %vm447_vm2, %v729_v23, %v444_v3  ;;  %v527_v3 = vsub.f32 0.0, %v1033_v25 }
 0x1bb   :  { %v471_v14 = vmul.f32 %v467_v55, %v1065_v33  ;;  %v1078_v10 = vsel %vm450_vm3, %v452_v15, %v448_v12  ;;  %v457_v59 = vmul.f32 0.17087276, %v1076_v11 }
 0x1bc   :  { %v476_v40 = vadd.f32 -1.135204, %v472_v57  ;;  %v458_v61 = vmul.f32 0.17087276, %v1078_v10 }
 0x1bd   :  { %v475_v13 = vadd.f32 -1.135204, %v471_v14  ;;  %v461_v17 = vadd.f32 -0.82215226, %v457_v59  ;;  %v532_v59 = vmul.f32 %v528_v56, %v1030_v62  ;;  %v595_v56 = vpop.permute.xlu2 %594 }
 0x1be   :  { %v480_v60 = vmul.f32 %v476_v40, %v1062_v30  ;;  %v462_v20 = vadd.f32 -0.82215226, %v458_v61 }
 0x1bf   :  { %v479_v16 = vmul.f32 %v475_v13, %v1065_v33  ;;  %v465_v2 = vmul.f32 %v461_v17, %v1076_v11 }
 0x1c0   :  { %v484_v19 = vadd.f32 0.27886808, %v480_v60  ;;  %v466_v5 = vmul.f32 %v462_v20, %v1078_v10 }
 0x1c1   :  { %v483_v22 = vadd.f32 0.27886808, %v479_v16  ;;  %v469_v1 = vadd.f32 1.4885159, %v465_v2  ;;  %v531_v16 = vmul.f32 %v527_v3, %v1033_v25 }
 0x1c2   :  { %v488_v26 = vmul.f32 %v484_v19, %v1062_v30  ;;  %v470_v0 = vadd.f32 1.4885159, %v466_v5 }
 0x1c3   :  { %v487_v4 = vmul.f32 %v483_v22, %v1065_v33  ;;  %v473_v29 = vmul.f32 %v469_v1, %v1076_v11 }
 0x1c4   :  { %v492_v27 = vadd.f32 -0.18628806, %v488_v26  ;;  %v474_v32 = vmul.f32 %v470_v0, %v1078_v10  ;;  %v529_v0 = vsub.f32 0.0, %v1052_v24 }
 0x1c5   :  { %v491_v28 = vadd.f32 -0.18628806, %v487_v4  ;;  %v477_v23 = vadd.f32 -1.135204, %v473_v29 }
 0x1c6   :  { %v496_v31 = vmul.f32 %v492_v27, %v1062_v30  ;;  %v478_v36 = vadd.f32 -1.135204, %v474_v32 }
 0x1c7   :  { %v495_v21 = vmul.f32 %v491_v28, %v1065_v33  ;;  %v481_v38 = vmul.f32 %v477_v23, %v1076_v11  ;;  %v530_v28 = vsub.f32 0.0, %v1055_v9 }
 0x1c8   :  { %v500_v34 = vadd.f32 0.09678418, %v496_v31  ;;  %v482_v41 = vmul.f32 %v478_v36, %v1078_v10 }
 0x1c9   :  { %v499_v37 = vadd.f32 0.09678418, %v495_v21  ;;  %v485_v44 = vadd.f32 0.27886808, %v481_v38  ;;  %v533_v21 = vmul.f32 %v529_v0, %v1052_v24  ;;  %v534_v36 = vmul.f32 %v530_v28, %v1055_v9 }
 0x1ca   :  { %v504_v39 = vmul.f32 %v500_v34, %v1062_v30  ;;  %v486_v45 = vadd.f32 0.27886808, %v482_v41  ;;  %v376_v9 = vmul.f32 0.5, %v1019_v46  ;;  %v378_v0 = vmul.f32 0.5, %v1043_v6 }
 0x1cb   :  { %v503_v42 = vmul.f32 %v499_v37, %v1065_v33  ;;  %v489_v50 = vmul.f32 %v485_v44, %v1076_v11 }
 0x1cc   :  { %v508_v18 = vadd.f32 0.37409195, %v504_v39  ;;  %v490_v53 = vmul.f32 %v486_v45, %v1078_v10 }
 0x1cd   :  { %v507_v48 = vadd.f32 0.37409195, %v503_v42  ;;  %v493_v63 = vadd.f32 -0.18628806, %v489_v50 }
 0x1ce   :  { %v512_v52 = vmul.f32 %v508_v18, %v1062_v30  ;;  %v494_v57 = vadd.f32 -0.18628806, %v490_v53 }
 0x1cf   :  { %v511_v54 = vmul.f32 %v507_v48, %v1065_v33  ;;  %v497_v14 = vmul.f32 %v493_v63, %v1076_v11 }
 0x1d0   :  { %v516_v55 = vadd.f32 1.0000237, %v512_v52  ;;  %v498_v15 = vmul.f32 %v494_v57, %v1078_v10  ;;  %v579_v57 = vrot.slane %v1021_v47, 4 }
 0x1d1   :  { %v515_v58 = vadd.f32 1.0000237, %v511_v54  ;;  %v501_v12 = vadd.f32 0.09678418, %v497_v14 }
 0x1d2   :  { %v520_v7 = vmul.f32 %v516_v55, %v1062_v30  ;;  %v502_v60 = vadd.f32 0.09678418, %v498_v15  ;;  %v580_v55 = vrot.slane %v1019_v46, 4 }
 0x1d3   :  { %v519_v40 = vmul.f32 %v515_v58, %v1065_v33  ;;  %v505_v17 = vmul.f32 %v501_v12, %v1076_v11 }
 0x1d4   :  { %v524_v13 = vadd.f32 -1.2655122, %v520_v7  ;;  %v506_v20 = vmul.f32 %v502_v60, %v1078_v10 }
 0x1d5   :  { %v523_v61 = vadd.f32 -1.2655122, %v519_v40  ;;  %v509_v2 = vadd.f32 0.37409195, %v505_v17 }
 0x1d6   :  { %v536_v19 = vadd.f32 %v532_v59, %v524_v13  ;;  %v510_v5 = vadd.f32 0.37409195, %v506_v20 }
 0x1d7   :  { %v535_v22 = vadd.f32 %v531_v16, %v523_v61  ;;  %v513_v1 = vmul.f32 %v509_v2, %v1076_v11 }
 0x1d8   :  { %v541_v26 = vmul.f32 1.442695, %v536_v19  ;;  %v514_v27 = vmul.f32 %v510_v5, %v1078_v10  ;;  %v623_v19 = vpop.permute.xlu1 %622 }
 0x1d9   :  { %v539_v4 = vmul.f32 1.442695, %v535_v22  ;;  %v517_v62 = vadd.f32 1.0000237, %v513_v1 }
 0x1da   :  { %730 = vpow2.f32 %v541_v26  ;;  %v518_v25 = vadd.f32 1.0000237, %v514_v27 }
 0x1db   :  { %732 = vpow2.f32 %v539_v4  ;;  %v521_v29 = vmul.f32 %v517_v62, %v1076_v11 }
 0x1dc   :  { %v522_v31 = vmul.f32 %v518_v25, %v1078_v10 }
 0x1dd   :  { %v525_v32 = vadd.f32 -1.2655122, %v521_v29  ;;  %v639_v29 = vpop.permute.xlu2 %638 }
 0x1de   :  { %v526_v34 = vadd.f32 -1.2655122, %v522_v31 }
 0x1df   :  { %v537_v39 = vadd.f32 %v533_v21, %v525_v32  ;;  %v581_v32 = vrot.slane %v1041_v35, 4 }
 0x1e0   :  { %v731_v23 = vpop.eup %730  ;;  %v538_v42 = vadd.f32 %v534_v36, %v526_v34 }
 0x1e1   :  { %v733_v37 = vpop.eup %732  ;;  %v548_v38 = vmul.f32 %v731_v23, %v1062_v30  ;;  %v543_v45 = vmul.f32 1.442695, %v537_v39 }
 0x1e2   :  { %v547_v41 = vmul.f32 %v733_v37, %v1065_v33  ;;  %v545_v52 = vmul.f32 1.442695, %v538_v42  ;;  %v375_v33 = vmul.f32 0.5, %v1021_v47 }
 0x1e3   :  { %v556_v44 = vsub.f32 1.0, %v548_v38  ;;  %v685_v18 = vadd.f32 -1.0, %v548_v38  ;;  %734 = vpow2.f32 %v543_v45 }
 0x1e4   :  { %v555_v48 = vsub.f32 1.0, %v547_v41  ;;  %v684_v50 = vadd.f32 -1.0, %v547_v41  ;;  %736 = vpow2.f32 %v545_v52 }
 0x1e5   :  { %v564_v24 = vsel %vm552_vm4, %v556_v44, %v685_v18 }
 0x1e6   :  { %v568_v53 = vadd.f32 1.0, %v564_v24  ;;  %v563_v30 = vsel %vm551_vm5, %v555_v48, %v684_v50 }
 0x1e7   :  { %v567_v54 = vadd.f32 1.0, %v563_v30 }
 0x1e8   :  { %v572_v63 = vmul.f32 %v568_v53, %v376_v9 }
 0x1e9   :  { %v571_v49 = vmul.f32 %v567_v54, %v375_v33  ;;  %v735_v3 = vpop.eup %734 }
 0x1ea   :  { %v588_v58 = vmul.f32 %v580_v55, %v572_v63  ;;  %v737_v7 = vpop.eup %736  ;;  %v549_v15 = vmul.f32 %v735_v3, %v1076_v11  ;;  %v377_v11 = vmul.f32 0.5, %v1041_v35 }
 0x1eb   :  { %v587_v14 = vmul.f32 %v579_v57, %v571_v49  ;;  %v550_v13 = vmul.f32 %v737_v7, %v1078_v10 }
 0x1ec   :  { %v598_v40 = vperm.slane %v588_v58, 0  ;;  %v610_v12 = vperm.slane %v588_v58, 1  ;;  %v626_v46 = vperm.slane %v588_v58, 2  ;;  %v557_v61 = vsub.f32 1.0, %v549_v15 }
 0x1ed   :  { %v597_v59 = vperm.slane %v587_v14, 0  ;;  %v609_v60 = vperm.slane %v587_v14, 1  ;;  %v686_v16 = vadd.f32 -1.0, %v549_v15  ;;  %v558_v20 = vsub.f32 1.0, %v550_v13 }
 0x1ee   :  { %v602_v17 = vmul.f32 %v598_v40, %v595_v56  ;;  %v614_v47 = vmul.f32 %v610_v12, %v607_v51  ;;  %v687_v22 = vadd.f32 -1.0, %v550_v13  ;;  %v625_v27 = vperm.slane %v587_v14, 2 }
 0x1ef   :  { %v601_v2 = vmul.f32 %v597_v59, %v595_v56  ;;  %v613_v26 = vmul.f32 %v609_v60, %v607_v51  ;;  %v565_v5 = vsel %vm553_vm6, %v557_v61, %v686_v16  ;;  %v630_v62 = vmul.f32 %v626_v46, %v623_v19 }
 0x1f0   :  { %v618_v10 = vadd.f32 %v614_v47, %v602_v17  ;;  %v566_v4 = vsel %vm554_vm7, %v558_v20, %v687_v22  ;;  %v569_v1 = vadd.f32 1.0, %v565_v5  ;;  %v642_v28 = vperm.slane %v588_v58, 3 }
 0x1f1   :  { %v570_v25 = vadd.f32 1.0, %v566_v4  ;;  %v617_v21 = vadd.f32 %v613_v26, %v601_v2  ;;  %v629_v36 = vmul.f32 %v625_v27, %v623_v19  ;;  %v641_v37 = vperm.slane %v587_v14, 3 }
 0x1f2   :  { %v573_v31 = vmul.f32 %v569_v1, %v377_v11  ;;  %v634_v23 = vadd.f32 %v630_v62, %v618_v10  ;;  %v646_v38 = vmul.f32 %v642_v28, %v639_v29 }
 0x1f3   :  { %v574_v34 = vmul.f32 %v570_v25, %v378_v0  ;;  %v633_v44 = vadd.f32 %v629_v36, %v617_v21  ;;  %v645_v9 = vmul.f32 %v641_v37, %v639_v29 }
 0x1f4   :  { %v589_v8 = vmul.f32 %v581_v32, %v573_v31  ;;  %v650_v18 = vadd.f32 %v646_v38, %v634_v23 }
 0x1f5   :  { %v590_v39 = vmul.f32 %v582_v43, %v574_v34  ;;  %v649_v54 = vadd.f32 %v645_v9, %v633_v44 }
 0x1f6   :  { %v599_v41 = vperm.slane %v589_v8, 0  ;;  %v611_v42 = vperm.slane %v589_v8, 1  ;;  %v627_v50 = vperm.slane %v589_v8, 2  ;;  %v657_v63 = vrot.slane %v650_v18, 4 }
 0x1f7   :  { %v600_v45 = vperm.slane %v590_v39, 0  ;;  %v612_v48 = vperm.slane %v590_v39, 1  ;;  %v628_v52 = vperm.slane %v590_v39, 2  ;;  %v644_v33 = vperm.slane %v590_v39, 3 }
 0x1f8   :  { %v603_v24 = vmul.f32 %v599_v41, %v595_v56  ;;  %v615_v35 = vmul.f32 %v611_v42, %v607_v51  ;;  %v631_v49 = vmul.f32 %v627_v50, %v623_v19  ;;  %v643_v58 = vperm.slane %v589_v8, 3 }
 0x1f9   :  { %v604_v53 = vmul.f32 %v600_v45, %v595_v56  ;;  %v616_v30 = vmul.f32 %v612_v48, %v607_v51  ;;  %v632_v57 = vmul.f32 %v628_v52, %v623_v19  ;;  %v660_v3 = vsel %vm659_vm8, %v649_v54, %v657_v63 }
 0x1fa   :  { %v619_v6 = vadd.f32 %v615_v35, %v603_v24  ;;  %v648_v15 = vmul.f32 %v644_v33, %v639_v29  ;;  %664 = vst [vmem:[#allocation7] sm:$0xff] %v660_v3  ;;  %v647_v40 = vmul.f32 %v643_v58, %v639_v29 }
 0x1fb   :  { %v620_v55 = vadd.f32 %v616_v30, %v604_v53 }
 0x1fc   :  { %v635_v14 = vadd.f32 %v631_v49, %v619_v6 }
 0x1fd   :  { %v636_v7 = vadd.f32 %v632_v57, %v620_v55 }
 0x1fe   :  { %v651_v56 = vadd.f32 %v647_v40, %v635_v14 }
 0x1ff   :  { %v652_v12 = vadd.f32 %v648_v15, %v636_v7 }
 0x201   :  { %v658_v51 = vrot.slane %v652_v12, 4 }
 0x203   :  { %v661_v13 = vsel %vm659_vm8, %v651_v56, %v658_v51 }
 0x204   :  { %665 = vst [vmem:[#allocation7 + $0x8] sm:$0xff] %v661_v13 }
 0x205   :  { %676 = dma.vmem_to_hbm [thread:$0]  %s672_s9, 256, %s674_s12, [#allocation4]  }
 0x206   :  { %814 = dma.done.wait [#allocation4], 256  }
 0x207   :  { %815 = vsyncadd [#allocation4], 4294967040 }
 0x208   :  { %681 = vsyncpa [#allocation3], 1 }
 0x209   :  { %682 = vsyncpa [#allocation6], 1 }
 0x20a   :  { %683 = vsyncpa [#allocation4], 1 }

</bundles_post_ra>
